<compile_context>
chip_gen: v7x
topology: tpu7x:2x2x1
jax: 0.10.0
libtpu: 0.0.40
codegen_flags: <defaults>
</compile_context>

<pallas_src>
import functools

import jax
import jax.numpy as jnp
from jax.experimental import pallas as pl
from jax.experimental.pallas import tpu as pltpu

# Chunk large copies across a few concurrent DMAs; a single DMA already
# saturates one engine, extra chunks only pay off for multi-MiB copies.
_MAX_DMA_CHUNKS = 4
_CHUNK_BYTES = 4 * 1024 * 1024


def _resolve_shape(numel, shape):
    """Resolve a single -1 dimension exactly like torch.Tensor.view does."""
    shape = list(shape)
    if shape.count(-1) > 1:
        raise ValueError("only one dimension can be inferred (-1)")
    if -1 in shape:
        known = 1
        for s in shape:
            if s != -1:
                known *= s
        if known == 0 or numel % known != 0:
            raise ValueError(f"shape {tuple(shape)} is invalid for input of size {numel}")
        shape[shape.index(-1)] = numel // known
    total = 1
    for s in shape:
        total *= s
    if total != numel:
        raise ValueError(f"shape {tuple(shape)} is invalid for input of size {numel}")
    return tuple(int(s) for s in shape)


def _dma_copy_kernel(x_hbm, o_hbm, sem, *, splits):
    """Direct HBM->HBM copy: start all chunked DMAs, then wait on all of them."""
    n = len(splits) - 1
    copies = []
    for c in range(n):
        if n == 1:
            src, dst = x_hbm, o_hbm          # full-ref copy (works for any rank)
        else:
            lo, sz = splits[c], splits[c + 1] - splits[c]
            src = x_hbm.at[pl.ds(lo, sz)]
            dst = o_hbm.at[pl.ds(lo, sz)]
        cp = pltpu.make_async_copy(src, dst, sem.at[c])
        cp.start()
        copies.append(cp)
    for cp in copies:
        cp.wait()


def tensor_view(t, *shape, materialize=False, dma_chunks=None):
    """Pallas equivalent of TensorView(*shape)(t) — torch.view semantics.

    materialize=False (default): metadata-only reshape, exactly like
    torch.Tensor.view on a contiguous tensor (free; no kernel launched).
    materialize=True: additionally produce a fresh copy of the data with a
    direct HBM->HBM DMA Pallas kernel.
    """
    out_shape = _resolve_shape(t.size, shape)

    # A contiguous view is metadata-only; also skip the DMA for empty arrays.
    # TODO(synk): sub-byte dtypes (int4) would need packed-size handling here.
    if not materialize or t.size == 0:
        return jnp.reshape(t, out_shape)

    # The view itself (free / fused by XLA); the kernel only does the copy.
    x = jnp.reshape(t, out_shape)

    # Chunk the copy along dim 0 for large arrays so several DMA engines run
    # concurrently; small copies use a single DMA (no per-chunk issue cost).
    nbytes = t.size * jnp.dtype(t.dtype).itemsize
    if dma_chunks is None:
        dma_chunks = _MAX_DMA_CHUNKS if nbytes >= _CHUNK_BYTES else 1
    dim0 = out_shape[0] if len(out_shape) >= 1 else 1
    n_chunks = max(1, min(int(dma_chunks), dim0))
    base, rem = divmod(dim0, n_chunks)
    splits = [0]
    for c in range(n_chunks):
        splits.append(splits[-1] + base + (1 if c < rem else 0))

    # NOTE: if the caller can donate `t`, input_output_aliases={0: 0} would drop
    # the extra HBM allocation — but then the copy itself is redundant
    # (src == dst), so the donated case is simply the materialize=False view.
    return pl.pallas_call(
        functools.partial(_dma_copy_kernel, splits=tuple(splits)),
        out_shape=jax.ShapeDtypeStruct(out_shape, t.dtype),
        in_specs=[pl.BlockSpec(memory_space=pl.ANY)],
        out_specs=pl.BlockSpec(memory_space=pl.ANY),
        scratch_shapes=[pltpu.SemaphoreType.DMA((n_chunks,))],
    )(x)


if __name__ == "__main__":
    key = jax.random.PRNGKey(0)
    # Small NCHW input consistent with typical use of TensorView after a conv.
    x = jax.random.normal(key, (2, 4, 16, 16), dtype=jnp.float32)
    ref = jnp.reshape(x, (2, 4, 256))

    # Default path: metadata-only view (matches torch.view semantics; no kernel).
    y_view = tensor_view(x, 2, 4, -1)
    assert y_view.shape == (2, 4, 256), y_view.shape
    assert bool(jnp.array_equal(y_view, ref))

    # Materialized path: exercises the single-DMA HBM->HBM Pallas kernel.
    y = tensor_view(x, 2, 4, -1, materialize=True)
    y = jax.block_until_ready(y)
    assert y.shape == (2, 4, 256), y.shape
    assert y.dtype == x.dtype
    assert bool(jnp.array_equal(y, ref))

    # Chunked-DMA path (chunk count forced so the test input stays tiny).
    y2 = tensor_view(x, 8, -1, materialize=True, dma_chunks=2)
    y2 = jax.block_until_ready(y2)
    assert y2.shape == (8, 256), y2.shape
    assert bool(jnp.array_equal(y2, jnp.reshape(x, (8, 256))))

    print("KERNEL_OK")
</pallas_src>

<mosaic_0001>
module attributes {stable_mosaic.version = 11 : i64} {
  func.func @_dma_copy_kernel(%arg0: memref<2x4x256xf32, #tpu.memory_space<any>>, %arg1: memref<2x4x256xf32, #tpu.memory_space<any>>, %arg2: memref<1x!tpu.dma_semaphore, #tpu.memory_space<semaphore_mem>>) attributes {dimension_semantics = [], scalar_prefetch = 0 : i64, scratch_operands = 1 : i64, tpu.core_type = #tpu.core_type<tc>} {
    %c0_i32 = arith.constant 0 : i32
    %0 = tpu.memref_slice %arg2[%c0_i32] : memref<1x!tpu.dma_semaphore, #tpu.memory_space<semaphore_mem>> -> memref<1x!tpu.dma_semaphore, #tpu.memory_space<semaphore_mem>>
    %1 = tpu.memref_squeeze %0 : memref<1x!tpu.dma_semaphore, #tpu.memory_space<semaphore_mem>> -> memref<!tpu.dma_semaphore, #tpu.memory_space<semaphore_mem>>
    tpu.enqueue_dma source(%arg0 : memref<2x4x256xf32, #tpu.memory_space<any>>) target(%arg1 : memref<2x4x256xf32, #tpu.memory_space<any>>) target_semaphore(%1 : memref<!tpu.dma_semaphore, #tpu.memory_space<semaphore_mem>>)
    %c0_i32_0 = arith.constant 0 : i32
    %2 = tpu.memref_slice %arg2[%c0_i32_0] : memref<1x!tpu.dma_semaphore, #tpu.memory_space<semaphore_mem>> -> memref<1x!tpu.dma_semaphore, #tpu.memory_space<semaphore_mem>>
    %3 = tpu.memref_squeeze %2 : memref<1x!tpu.dma_semaphore, #tpu.memory_space<semaphore_mem>> -> memref<!tpu.dma_semaphore, #tpu.memory_space<semaphore_mem>>
    tpu.wait_dma2 semaphore(%3 : memref<!tpu.dma_semaphore, #tpu.memory_space<semaphore_mem>>) src(%arg0 : memref<2x4x256xf32, #tpu.memory_space<any>>) dst(%arg1 : memref<2x4x256xf32, #tpu.memory_space<any>>)
    return
  }
}

</mosaic_0001>

<bundles_post_ra>
// kernel: tpu_custom_call.1
= control target key start
LH: loop header
LB: loop body
LE: loop exit
PB: predicated region body
PF: predicated region fallthrough
CT: control target
= control target key end

     0   :  { %s36_s6 = smov [#allocation2]   ;;  %s37_s7 = smov [#allocation3]   ;;  %s55_s0 = inlined_call_operand.hbm [shape: f32[2,4,256], index: 0, kind: input, shape index: {}]   ;;  %s56_s1 = inlined_call_operand.hbm [shape: f32[2,4,256], index: 1, kind: output, shape index: {}]  }
   0x1   :  { %s38_s8 = smov 0  }
   0x2   :  { %18 = dma.general %s55_s0, 256, %s56_s1, %s36_s6, %s37_s7, [#allocation4], %s38_s8, 0  }
   0x3   :  { %34 = dma.done.wait [#allocation2], 256 }
   0x4   :  { %35 = vsyncadd [#allocation2], 4294967040 }
   0x5   :  { %24 = vsyncmov [#allocation2] }
   0x8   :  { %s25_s13 = vpop.sfrf %24 }
   0x9   :  { %p30_p0 = scmp.ne.s32.totalorder %s25_s13, 0 }
   0xb   :  { %29 = shalt.err (%p30_p0)  }

</bundles_post_ra>
